<compile_context>
chip_gen: v6e
topology: v6e:2x2x1
jax: 0.10.0
libtpu: 0.0.40
codegen_flags: <defaults>
</compile_context>

<pallas_src>
import functools

import jax
import jax.numpy as jnp
from jax import lax
from jax.experimental import pallas as pl
from jax.experimental.pallas import tpu as pltpu

_LANES = 128
# Max rows per tile: 512x128 f32 = 256 KiB/buffer.  With 2 inputs + 1 same-size output,
# double-buffered, VMEM stays well under the scoped limit on v5e/v6e/v7x while reaching
# ~85% of HBM roofline for a streaming kernel.
_MAX_TILE_ROWS = 512


def _bce_kernel(z_ref, y_ref, pred_ref, loss_ref, *, true_n, tile_rows, needs_mask):
    i = pl.program_id(0)

    # Cast to f32 only inside the kernel (inputs are streamed in native dtype).
    z = z_ref[...].astype(jnp.float32)          # (tile_rows, 128) logits
    y = y_ref[...].astype(jnp.float32)          # (tile_rows, 128) labels

    # Numerically stable BCE-with-logits (matches F.binary_cross_entropy_with_logits):
    #   max(z, 0) - z*y + log(1 + exp(-|z|))
    per = jnp.maximum(z, 0.0) - z * y + jnp.log1p(jnp.exp(-jnp.abs(z)))

    if needs_mask:
        # Mask padded tail elements (global flat index >= true_n) out of the loss.
        row = lax.broadcasted_iota(jnp.int32, (tile_rows, _LANES), 0)
        col = lax.broadcasted_iota(jnp.int32, (tile_rows, _LANES), 1)
        gidx = (i * tile_rows + row) * _LANES + col
        per = jnp.where(gidx < true_n, per, 0.0)

    # Per-tile partial sum, kept lane-dense as a single (8, 128) vreg.
    loss_ref[...] = per.reshape(tile_rows // 8, 8, _LANES).sum(axis=0)

    # prediction = sigmoid(logits); lane-dense (tile_rows, 128) store (EUP transcendental).
    pred_ref[...] = jax.nn.sigmoid(z)


def bce_with_logits_loss(logits, label_indexes):
    """
    logits        : [..., 1] or [...] float (any float dtype)
    label_indexes : labels (0/1) with the same number of elements, any numeric dtype

    Returns (loss scalar f32, prediction f32 shaped like logits.squeeze(-1)),
    matching BinaryCrossEntropyLoss.forward -> (loss, prediction).
    """
    if logits.ndim > 0 and logits.shape[-1] == 1:
        pred_shape = logits.shape[:-1]           # torch .squeeze(-1) semantics
    else:
        pred_shape = logits.shape

    z_flat = jnp.reshape(logits, (-1,))
    y_flat = jnp.reshape(label_indexes, (-1,))
    n = z_flat.shape[0]
    assert y_flat.shape[0] == n, "logits and labels must have the same number of elements"

    # Lane-dense layout: flat length -> (rows_pad, 128), rows_pad = grid * tile_rows,
    # tile_rows a multiple of 8 sublanes, chosen to minimize padding.
    rows = -(-n // _LANES)                       # ceil(n / 128)
    rows = ((rows + 7) // 8) * 8                 # sublane multiple
    grid = max(1, -(-rows // _MAX_TILE_ROWS))    # number of tiles
    tile_rows = -(-rows // grid)
    tile_rows = ((tile_rows + 7) // 8) * 8
    rows_pad = grid * tile_rows
    n_pad = rows_pad * _LANES

    z2 = jnp.pad(z_flat, (0, n_pad - n)).reshape(rows_pad, _LANES)
    y2 = jnp.pad(y_flat, (0, n_pad - n)).reshape(rows_pad, _LANES)

    kernel = functools.partial(
        _bce_kernel, true_n=n, tile_rows=tile_rows, needs_mask=(n_pad != n)
    )

    pred2, loss_parts = pl.pallas_call(
        kernel,
        grid=(grid,),
        out_shape=(
            jax.ShapeDtypeStruct((rows_pad, _LANES), jnp.float32),   # sigmoid(logits)
            jax.ShapeDtypeStruct((8, grid * _LANES), jnp.float32),   # per-tile partial sums
        ),
        in_specs=[
            pl.BlockSpec((tile_rows, _LANES), lambda i: (i, 0)),
            pl.BlockSpec((tile_rows, _LANES), lambda i: (i, 0)),
        ],
        out_specs=(
            pl.BlockSpec((tile_rows, _LANES), lambda i: (i, 0)),
            pl.BlockSpec((8, _LANES), lambda i: (0, i)),
        ),
        compiler_params=pltpu.CompilerParams(
            dimension_semantics=("parallel",),
            vmem_limit_bytes=32 * 1024 * 1024,
        ),
    )(z2, y2)

    loss = jnp.sum(loss_parts) / jnp.float32(n)     # 'mean' reduction over true elements
    pred = pred2.reshape(-1)[:n].reshape(pred_shape)
    return loss, pred


def _reference(logits, label_indexes):
    z = jnp.reshape(logits, (-1,)).astype(jnp.float32)
    y = jnp.reshape(label_indexes, (-1,)).astype(jnp.float32)
    per = jnp.maximum(z, 0.0) - z * y + jnp.log1p(jnp.exp(-jnp.abs(z)))
    return jnp.mean(per), jax.nn.sigmoid(z)


if __name__ == "__main__":
    key = jax.random.PRNGKey(0)
    k1, k2, k3, k4 = jax.random.split(key, 4)

    # Case 1: small batch consistent with the module: logits [B, 1], labels [B].
    batch = 8
    logits = jax.random.normal(k1, (batch, 1), dtype=jnp.float32) * 3.0
    labels = jax.random.bernoulli(k2, 0.5, (batch,)).astype(jnp.int32)

    loss, pred = bce_with_logits_loss(logits, labels)
    jax.block_until_ready((loss, pred))

    ref_loss, ref_pred = _reference(logits, labels)
    assert pred.shape == (batch,), pred.shape
    assert jnp.allclose(loss, ref_loss, atol=1e-5, rtol=1e-5), (loss, ref_loss)
    assert jnp.allclose(pred, ref_pred, atol=1e-5, rtol=1e-5)

    # Case 2: batch not a multiple of the 8x128 tile, exercising the padding mask.
    batch2 = 300
    logits2 = jax.random.normal(k3, (batch2, 1), dtype=jnp.float32) * 2.0
    labels2 = jax.random.bernoulli(k4, 0.5, (batch2,)).astype(jnp.int32)

    loss2, pred2 = bce_with_logits_loss(logits2, labels2)
    jax.block_until_ready((loss2, pred2))

    ref_loss2, ref_pred2 = _reference(logits2, labels2)
    assert pred2.shape == (batch2,), pred2.shape
    assert jnp.allclose(loss2, ref_loss2, atol=1e-5, rtol=1e-5), (loss2, ref_loss2)
    assert jnp.allclose(pred2, ref_pred2, atol=1e-5, rtol=1e-5)

    print("KERNEL_OK")
</pallas_src>

<mosaic_0001>
module attributes {stable_mosaic.version = 11 : i64} {
  func.func @_bce_kernel(%arg0: i32, %arg1: memref<8x128xf32, #tpu.memory_space<vmem>>, %arg2: memref<8x128xi32, #tpu.memory_space<vmem>>, %arg3: memref<8x128xf32, #tpu.memory_space<vmem>>, %arg4: memref<8x128xf32, #tpu.memory_space<vmem>>) attributes {dimension_semantics = [#tpu.dimension_semantics<parallel>], iteration_bounds = array<i64: 1>, scalar_prefetch = 0 : i64, scratch_operands = 0 : i64, tpu.core_type = #tpu.core_type<tc>, window_params = [{transform_indices = @transform_0, window_bounds = array<i64: 8, 128>}, {transform_indices = @transform_1, window_bounds = array<i64: 8, 128>}, {transform_indices = @transform_2, window_bounds = array<i64: 8, 128>}, {transform_indices = @transform_3, window_bounds = array<i64: 8, 128>}]} {
    %c0 = arith.constant 0 : index
    %c0_0 = arith.constant 0 : index
    %0 = vector.load %arg1[%c0, %c0_0] : memref<8x128xf32, #tpu.memory_space<vmem>>, vector<8x128xf32>
    %c0_1 = arith.constant 0 : index
    %c0_2 = arith.constant 0 : index
    %1 = vector.load %arg2[%c0_1, %c0_2] : memref<8x128xi32, #tpu.memory_space<vmem>>, vector<8x128xi32>
    %2 = arith.sitofp %1 : vector<8x128xi32> to vector<8x128xf32>
    %cst = arith.constant 0.000000e+00 : f32
    %3 = vector.broadcast %cst : f32 to vector<8x128xf32>
    %4 = arith.maximumf %0, %3 : vector<8x128xf32>
    %5 = arith.mulf %0, %2 : vector<8x128xf32>
    %6 = arith.subf %4, %5 : vector<8x128xf32>
    %7 = math.absf %0 : vector<8x128xf32>
    %cst_3 = arith.constant 0.000000e+00 : f32
    %8 = vector.broadcast %cst_3 : f32 to vector<8x128xf32>
    %9 = arith.subf %8, %7 : vector<8x128xf32>
    %10 = math.exp %9 : vector<8x128xf32>
    %11 = math.log1p %10 : vector<8x128xf32>
    %12 = arith.addf %6, %11 : vector<8x128xf32>
    %13 = tpu.iota {dimensions = array<i32: 0>} : vector<8x128xi32>
    %14 = tpu.iota {dimensions = array<i32: 1>} : vector<8x128xi32>
    %c8_i32 = arith.constant 8 : i32
    %15 = arith.muli %arg0, %c8_i32 : i32
    %16 = vector.broadcast %15 : i32 to vector<8x128xi32>
    %17 = arith.addi %16, %13 : vector<8x128xi32>
    %c128_i32 = arith.constant 128 : i32
    %18 = vector.broadcast %c128_i32 : i32 to vector<8x128xi32>
    %19 = arith.muli %17, %18 : vector<8x128xi32>
    %20 = arith.addi %19, %14 : vector<8x128xi32>
    %c8_i32_4 = arith.constant 8 : i32
    %21 = vector.broadcast %c8_i32_4 : i32 to vector<8x128xi32>
    %22 = arith.cmpi slt, %20, %21 : vector<8x128xi32>
    %cst_5 = arith.constant 0.000000e+00 : f32
    %23 = vector.broadcast %cst_5 : f32 to vector<8x128xf32>
    %24 = arith.select %22, %12, %23 : vector<8x128xi1>, vector<8x128xf32>
    %25 = vector.shape_cast %24 : vector<8x128xf32> to vector<1x8x128xf32>
    %cst_6 = arith.constant dense<0.000000e+00> : vector<8x128xf32>
    %26 = vector.multi_reduction <add>, %25, %cst_6 [0] : vector<1x8x128xf32> to vector<8x128xf32>
    %c0_7 = arith.constant 0 : index
    %c0_8 = arith.constant 0 : index
    %27 = vector.load %arg4[%c0_7, %c0_8] : memref<8x128xf32, #tpu.memory_space<vmem>>, vector<8x128xf32>
    tpu.vector_store %arg4[%c0_7, %c0_8], %26 {strides = array<i32>} : memref<8x128xf32, #tpu.memory_space<vmem>>, vector<8x128xf32>,
    %28 = arith.negf %0 : vector<8x128xf32>
    %29 = math.exp %28 : vector<8x128xf32>
    %cst_9 = arith.constant 1.000000e+00 : f32
    %30 = vector.broadcast %cst_9 : f32 to vector<8x128xf32>
    %31 = arith.addf %30, %29 : vector<8x128xf32>
    %32 = arith.divf %30, %31 : vector<8x128xf32>
    %c0_10 = arith.constant 0 : index
    %c0_11 = arith.constant 0 : index
    %33 = vector.load %arg3[%c0_10, %c0_11] : memref<8x128xf32, #tpu.memory_space<vmem>>, vector<8x128xf32>
    tpu.vector_store %arg3[%c0_10, %c0_11], %32 {strides = array<i32>} : memref<8x128xf32, #tpu.memory_space<vmem>>, vector<8x128xf32>,
    return
  }
  func.func @transform_0(%arg0: i32) -> (i32, i32) {
    %c0_i32 = arith.constant 0 : i32
    %c0_i32_0 = arith.constant 0 : i32
    return %arg0, %c0_i32 : i32, i32
  }
  func.func @transform_1(%arg0: i32) -> (i32, i32) {
    %c0_i32 = arith.constant 0 : i32
    %c0_i32_0 = arith.constant 0 : i32
    return %arg0, %c0_i32 : i32, i32
  }
  func.func @transform_2(%arg0: i32) -> (i32, i32) {
    %c0_i32 = arith.constant 0 : i32
    %c0_i32_0 = arith.constant 0 : i32
    return %arg0, %c0_i32 : i32, i32
  }
  func.func @transform_3(%arg0: i32) -> (i32, i32) {
    %c0_i32 = arith.constant 0 : i32
    %c0_i32_0 = arith.constant 0 : i32
    return %c0_i32, %arg0 : i32, i32
  }
}

</mosaic_0001>

<bundles_post_ra>
// kernel: tpu_custom_call.1
= control target key start
LH: loop header
LB: loop body
LE: loop exit
PB: predicated region body
PF: predicated region fallthrough
CT: control target
= control target key end

     0   :  { %9 = vsyncpa [#allocation3], 0  ;;  %s246_s0 = inlined_call_operand.hbm [shape: f32[8,128], index: 0, kind: input, shape index: {}]   ;;  %s247_s1 = inlined_call_operand.hbm [shape: s32[8,128], index: 1, kind: input, shape index: {}]   ;;  %s248_s2 = inlined_call_operand.hbm [shape: f32[8,128], index: 2, kind: output, shape index: {0}]   ;;  %s249_s3 = inlined_call_operand.hbm [shape: f32[8,128], index: 3, kind: output, shape index: {1}]  }
   0x1   :  { %10 = vsyncpa [#allocation6], 0 }
   0x2   :  { %11 = vsyncpa [#allocation4], 0 }
   0x3   :  { %12 = vsyncpa [#allocation9], 0  ;;  %s210_s12 = smov [#allocation2]   ;;  %s211_s14 = smov [#allocation5]  }
   0x4   :  { %s19_s13 = sshll.u32 %s210_s12, 4  ;;  %s29_s15 = sshll.u32 %s211_s14, 4  ;;  %s20_s13 = int_to_ptr.vmem [resolvable:$true] %s19_s13  ;;  %s30_s15 = int_to_ptr.vmem [resolvable:$true] %s29_s15 }
   0x5   :  { %s130_s16 = scalar_lea.vmem %s20_s13, 128  ;;  %p135_p1 = scmp.lt.s32.totalorder %s20_s13, %s20_s13 }
   0x6   :  { %p131_p0 = scmp.ne.s32.totalorder %s20_s13, %s130_s16  ;;  %p136_p2 = scmp.lt.s32.totalorder %s130_s16, %s130_s16 }
   0x8   :  { %p137_p3 = por %p136_p2, %p135_p1 }
   0xa   :  { %p138_p4 = pnand %p137_p3, %p131_p0 }
   0xc   :  { %141 = shalt.err (!%p138_p4)
}
   0xd   :  { %22 = dma.hbm_to_vmem [thread:$0]  %s246_s0, 128, %s20_s13, [#allocation3]  }
   0xe   :  { %s150_s19 = scalar_lea.vmem %s30_s15, 128  ;;  %p155_p6 = scmp.lt.s32.totalorder %s30_s15, %s30_s15 }
   0xf   :  { %p151_p5 = scmp.ne.s32.totalorder %s30_s15, %s150_s19  ;;  %p156_p7 = scmp.lt.s32.totalorder %s150_s19, %s150_s19 }
  0x11   :  { %p157_p8 = por %p156_p7, %p155_p6 }
  0x13   :  { %p158_p9 = pnand %p157_p8, %p151_p5 }
  0x15   :  { %161 = shalt.err (!%p158_p9)
}
  0x16   :  { %32 = dma.hbm_to_vmem [thread:$0]  %s247_s1, 128, %s30_s15, [#allocation6]  }
  0x17   :  { %202 = dma.done.wait [#allocation3], 128  }
  0x18   :  { %203 = vsyncadd [#allocation3], 4294967168 }
  0x19   :  { %204 = dma.done.wait [#allocation6], 128  }
  0x1a   :  { %205 = vsyncadd [#allocation6], 4294967168  ;;  %v39_v0 = vld [vmem:[#allocation2] sm:$0xff]  ;;  %v59_v9 = vlaneseq  ;;  %v40_v10 = vld [vmem:[#allocation5] sm:$0xff]  ;;  %s212_s0 = smov [#allocation7]  }
  0x1b   :  { %v45_v1 = vand.u32 2147483647, %v39_v0  ;;  %v109_v2 = vmul.f32 -1.442695, %v39_v0  ;;  %v41_v13 = vcvt.s32.f32 %v40_v10  ;;  %s85_s1 = sshll.u32 %s212_s0, 4  ;;  %v42_v17 = vmax.f32 %v39_v0, 0.0  ;;  %s86_s1 = int_to_ptr.vmem [resolvable:$true] %s85_s1 }
  0x1c   :  { %v60_v12 = vshrl.u32 %v59_v9, 7  ;;  %v62_v15 = vand.u32 127, %v59_v9  ;;  %s162_s22 = scalar_lea.vmem %s86_s1, 128  ;;  %p167_p11 = scmp.lt.s32.totalorder %s86_s1, %s86_s1 }
  0x1d   :  { %v46_v3 = vsub.f32 0.0, %v45_v1  ;;  %114 = vpow2.f32 %v109_v2  ;;  %v43_v18 = vmul.f32 %v41_v13, %v39_v0  ;;  %p163_p10 = scmp.ne.s32.totalorder %s86_s1, %s162_s22  ;;  %p168_p12 = scmp.lt.s32.totalorder %s162_s22, %s162_s22 }
  0x1e   :  { %v66_v16 = vmul.u32 128, %v60_v12 }
  0x1f   :  { %v47_v4 = vmul.f32 1.442695, %v46_v3  ;;  %p169_p13 = por %p168_p12, %p167_p11 }
  0x20   :  { %v67_v22 = vadd.s32 %v66_v16, %v62_v15 }
  0x21   :  { %116 = vpow2.f32 %v47_v4  ;;  %p170_p0 = pnand %p169_p13, %p163_p10 }
  0x2a   :  { %v115_v5 = vpop.eup %114 }
  0x2b   :  { %v75_v6 = vadd.f32 1.0, %v115_v5 }
  0x2d   :  { %118 = vrcp.f32 %v75_v6 }
  0x2e   :  { %v117_v7 = vpop.eup %116 }
  0x2f   :  { %v49_v8 = vadd.f32 1.0, %v117_v7  ;;  %v52_v11 = vmul.f32 -0.5, %v117_v7  ;;  %v55_v19 = vand.u32 2147483647, %v117_v7 }
  0x31   :  { %120 = vlog2.f32 %v49_v8  ;;  %v53_v14 = vadd.f32 1.0, %v52_v11 }
  0x33   :  { %v54_v21 = vmul.f32 %v117_v7, %v53_v14 }
  0x3a   :  { %v119_v20 = vpop.eup %118 }
  0x3b   :  { %78 = vst [vmem:[#allocation7] sm:$0xff] %v119_v20 }
  0x3c   :  { %173 = shalt.err (!%p170_p0)
}
  0x3d   :  { %88 = dma.vmem_to_hbm [thread:$0]  %s86_s1, 128, %s248_s2, [#allocation4]   ;;  %v44_v24 = vsub.f32 %v42_v17, %v43_v18  ;;  %vm56_vm0 = vcmp.lt.f32.partialorder %v55_v19, 0.0004427343  ;;  %vm68_vm1 = vcmp.lt.s32.totalorder %v67_v22, 8 }
  0x3e   :  { %v121_v23 = vpop.eup %120  ;;  %s213_s25 = smov [#allocation8]  }
  0x3f   :  { %v51_v25 = vmul.f32 0.6931472, %v121_v23  ;;  %s95_s26 = sshll.u32 %s213_s25, 4  ;;  %s96_s26 = int_to_ptr.vmem [resolvable:$true] %s95_s26 }
  0x40   :  { %s182_s27 = scalar_lea.vmem %s96_s26, 128  ;;  %p187_p2 = scmp.lt.s32.totalorder %s96_s26, %s96_s26 }
  0x41   :  { %v57_v26 = vsel %vm56_vm0, %v54_v21, %v51_v25  ;;  %p183_p1 = scmp.ne.s32.totalorder %s96_s26, %s182_s27  ;;  %p188_p3 = scmp.lt.s32.totalorder %s182_s27, %s182_s27 }
  0x42   :  { %v58_v27 = vadd.f32 %v57_v26, %v44_v24 }
  0x43   :  { %p189_p4 = por %p188_p3, %p187_p2 }
  0x44   :  { %v69_v28 = vsel %vm68_vm1, %v58_v27, 0.0 }
  0x45   :  { %71 = vst [vmem:[#allocation8] sm:$0xff] %v69_v28  ;;  %p190_p5 = pnand %p189_p4, %p183_p1 }
  0x47   :  { %193 = shalt.err (!%p190_p5)
}
  0x48   :  { %98 = dma.vmem_to_hbm [thread:$0]  %s96_s26, 128, %s249_s3, [#allocation9]  }
  0x49   :  { %206 = dma.done.wait [#allocation4], 128  }
  0x4a   :  { %207 = vsyncadd [#allocation4], 4294967168 }
  0x4b   :  { %208 = dma.done.wait [#allocation9], 128  }
  0x4c   :  { %209 = vsyncadd [#allocation9], 4294967168 }
  0x4d   :  { %105 = vsyncpa [#allocation3], 1 }
  0x4e   :  { %106 = vsyncpa [#allocation6], 1 }
  0x4f   :  { %107 = vsyncpa [#allocation4], 1 }
  0x50   :  { %108 = vsyncpa [#allocation9], 1 }

</bundles_post_ra>
